<compile_context>
chip_gen: v7x
topology: tpu7x:2x2x1
jax: 0.10.0
libtpu: 0.0.40
codegen_flags: <defaults>
</compile_context>

<pallas_src>
import functools

import jax
import jax.numpy as jnp
from jax.experimental import pallas as pl
from jax.experimental.pallas import tpu as pltpu


def _round_up(x, m):
    return ((x + m - 1) // m) * m


def _adapter_mask_kernel(*refs, separate_residual, add_residual):
    # Gates are pre-folded into W1/b1 and W2/b2 in the wrapper.
    if separate_residual:
        x_ref, res_ref, w1_ref, b1_ref, w2_ref, b2_ref, o_ref = refs
    else:
        x_ref, w1_ref, b1_ref, w2_ref, b2_ref, o_ref = refs
        res_ref = x_ref  # residual is x: reuse the same VMEM tile, no 2nd DMA

    x = x_ref[...]
    # fc1: relu(x @ (W1*g1) + b1*g1)   -- bf16 operands, f32 accumulation
    h = jnp.dot(x.astype(jnp.bfloat16), w1_ref[...],
                preferred_element_type=jnp.float32)
    h = jnp.maximum(h + b1_ref[...], 0.0)
    # fc2: relu(h @ (W2*g2) + b2*g2)
    h2 = jnp.dot(h.astype(jnp.bfloat16), w2_ref[...],
                 preferred_element_type=jnp.float32)
    h2 = jnp.maximum(h2 + b2_ref[...], 0.0)
    if add_residual:
        h2 = h2 + res_ref[...].astype(jnp.float32)
    o_ref[...] = h2.astype(o_ref.dtype)


def roberta_adapter_mask_forward(x, t, s, params, *, smax=400,
                                 add_residual=True, residual=None,
                                 hard_gate=None, tm=512):
    """x: (B, S, H) float32; t: python int task id; s: python float scalar.

    `s` / `smax` / `add_residual` are treated as static (Python-level) values,
    mirroring the PyTorch module's Python branches; `hard_gate` can be passed
    explicitly to avoid float-equality on s == smax.
    """
    B, S, H = x.shape
    A = params["w1"].shape[1]

    # --- mask(): tiny glue in plain JAX (O(A + H) work) ---
    if hard_gate is None:
        hard_gate = float(s) == float(smax)
    efc1 = params["efc1"][t]                 # (A,)
    efc2 = params["efc2"][t]                 # (H,)
    gfc1 = jax.nn.sigmoid(s * efc1)
    gfc2 = jax.nn.sigmoid(s * efc2)
    if hard_gate:
        gfc1 = (gfc1 > 0.5).astype(jnp.float32)
        gfc2 = (gfc2 > 0.5).astype(jnp.float32)

    # Fold the (non-negative) gates into weights/biases:
    #   relu(x@W + b) * g == relu(x@(W*g) + b*g)   since g >= 0.
    w1 = (params["w1"] * gfc1[None, :]).astype(jnp.bfloat16)   # (H, A)
    b1 = (params["b1"] * gfc1).reshape(1, A).astype(jnp.float32)
    w2 = (params["w2"] * gfc2[None, :]).astype(jnp.bfloat16)   # (A, H)
    b2 = (params["b2"] * gfc2).reshape(1, H).astype(jnp.float32)

    separate_residual = add_residual and (residual is not None)

    # --- row tiling: big tiles, pad M instead of asserting divisibility ---
    M = B * S
    tm_eff = _round_up(min(tm, M), 8)
    M_pad = _round_up(M, tm_eff)

    x2 = x.reshape(M, H)
    if M_pad != M:
        x2 = jnp.pad(x2, ((0, M_pad - M), (0, 0)))

    inputs = [x2]
    in_specs = [pl.BlockSpec((tm_eff, H), lambda i: (i, 0))]        # x rows
    if separate_residual:
        r2 = residual.reshape(M, H)
        if M_pad != M:
            r2 = jnp.pad(r2, ((0, M_pad - M), (0, 0)))
        inputs.append(r2)
        in_specs.append(pl.BlockSpec((tm_eff, H), lambda i: (i, 0)))  # res rows
    inputs += [w1, b1, w2, b2]
    in_specs += [
        pl.BlockSpec((H, A), lambda i: (0, 0)),                     # W1*g1
        pl.BlockSpec((1, A), lambda i: (0, 0)),                     # b1*g1
        pl.BlockSpec((A, H), lambda i: (0, 0)),                     # W2*g2
        pl.BlockSpec((1, H), lambda i: (0, 0)),                     # b2*g2
    ]

    # VMEM budget: double-buffered x/out tiles (+residual), 2x bf16 weights,
    # biases, plus intermediates; keep within 64 MiB so v7x also fits.
    est = (2 * 2 * tm_eff * H * 4
           + (2 * tm_eff * H * 4 if separate_residual else 0)
           + 2 * 2 * (H * A) * 2
           + 4 * (A + H) * 4
           + tm_eff * max(A, H) * 4)
    vmem_limit = min(max(int(est * 1.5), 32 * 1024 * 1024), 64 * 1024 * 1024)

    kernel = functools.partial(_adapter_mask_kernel,
                               separate_residual=separate_residual,
                               add_residual=add_residual)

    out = pl.pallas_call(
        kernel,
        out_shape=jax.ShapeDtypeStruct((M_pad, H), x.dtype),
        grid_spec=pltpu.PrefetchScalarGridSpec(
            num_scalar_prefetch=0,
            grid=(M_pad // tm_eff,),
            in_specs=in_specs,
            out_specs=pl.BlockSpec((tm_eff, H), lambda i: (i, 0)),
        ),
        compiler_params=pltpu.CompilerParams(
            dimension_semantics=("parallel",),
            vmem_limit_bytes=vmem_limit),
    )(*inputs)

    if M_pad != M:
        out = out[:M]
    return out.reshape(B, S, H)


def init_params(key, hidden_size, adapter_size, ntasks):
    ks = jax.random.split(key, 6)
    # Linear weights stored (in, out) for the kernel (PyTorch stores (out, in)).
    w1 = jax.random.normal(ks[0], (hidden_size, adapter_size), jnp.float32) * 0.02
    b1 = jax.random.normal(ks[1], (adapter_size,), jnp.float32) * 0.02
    w2 = jax.random.normal(ks[2], (adapter_size, hidden_size), jnp.float32) * 0.02
    b2 = jax.random.normal(ks[3], (hidden_size,), jnp.float32) * 0.02
    efc1 = jax.random.normal(ks[4], (ntasks, adapter_size), jnp.float32)
    efc2 = jax.random.normal(ks[5], (ntasks, hidden_size), jnp.float32)
    return dict(w1=w1, b1=b1, w2=w2, b2=b2, efc1=efc1, efc2=efc2)


def _reference(x, t, s, params, smax=400, add_residual=True, residual=None):
    efc1 = params["efc1"][t]
    efc2 = params["efc2"][t]
    gfc1 = jax.nn.sigmoid(s * efc1)
    gfc2 = jax.nn.sigmoid(s * efc2)
    if s == smax:
        gfc1 = (gfc1 > 0.5).astype(jnp.float32)
        gfc2 = (gfc2 > 0.5).astype(jnp.float32)
    h = jnp.maximum(x @ params["w1"] + params["b1"], 0.0) * gfc1
    h = jnp.maximum(h @ params["w2"] + params["b2"], 0.0) * gfc2
    residual = x if residual is None else residual
    return residual + h if add_residual else h


if __name__ == "__main__":
    B, S, H, A, NTASKS, SMAX = 2, 8, 32, 16, 3, 400
    key = jax.random.PRNGKey(0)
    kx, kp = jax.random.split(key)

    x = jax.random.normal(kx, (B, S, H), jnp.float32)
    params = init_params(kp, H, A, NTASKS)
    t = 1          # task id
    s = 4.0        # annealing temperature (s != smax -> soft gates)

    # Default path: residual is x (single activation stream through the kernel).
    out = roberta_adapter_mask_forward(x, t, s, params, smax=SMAX)
    out = jax.block_until_ready(out)
    ref = _reference(x, t, s, params, smax=SMAX)
    assert out.shape == (B, S, H)
    # bf16 MXU operands with f32 accumulation -> looser tolerance vs f32 ref.
    assert jnp.allclose(out, ref, atol=2e-2, rtol=2e-2), "mismatch (residual path)"

    # add_residual=False path: no residual stream, no zeros tensor materialized.
    out_nr = roberta_adapter_mask_forward(x, t, s, params, smax=SMAX,
                                          add_residual=False)
    out_nr = jax.block_until_ready(out_nr)
    ref_nr = _reference(x, t, s, params, smax=SMAX, add_residual=False)
    assert jnp.allclose(out_nr, ref_nr, atol=2e-2, rtol=2e-2), "mismatch (no-residual)"

    print("KERNEL_OK")
</pallas_src>

<mosaic_0001>
module attributes {stable_mosaic.version = 11 : i64} {
  func.func @_adapter_mask_kernel(%arg0: i32, %arg1: memref<16x32xf32, #tpu.memory_space<vmem>>, %arg2: memref<32x16xbf16, #tpu.memory_space<vmem>>, %arg3: memref<1x16xf32, #tpu.memory_space<vmem>>, %arg4: memref<16x32xbf16, #tpu.memory_space<vmem>>, %arg5: memref<1x32xf32, #tpu.memory_space<vmem>>, %arg6: memref<16x32xf32, #tpu.memory_space<vmem>>) attributes {dimension_semantics = [#tpu.dimension_semantics<parallel>], iteration_bounds = array<i64: 1>, scalar_prefetch = 0 : i64, scratch_operands = 0 : i64, tpu.core_type = #tpu.core_type<tc>, window_params = [{transform_indices = @transform_0, window_bounds = array<i64: 16, 32>}, {pipeline_mode = #tpu.pipeline_mode<synchronous>, transform_indices = @transform_1, window_bounds = array<i64: 32, 16>}, {pipeline_mode = #tpu.pipeline_mode<synchronous>, transform_indices = @transform_2, window_bounds = array<i64: 1, 16>}, {pipeline_mode = #tpu.pipeline_mode<synchronous>, transform_indices = @transform_3, window_bounds = array<i64: 16, 32>}, {pipeline_mode = #tpu.pipeline_mode<synchronous>, transform_indices = @transform_4, window_bounds = array<i64: 1, 32>}, {transform_indices = @transform_5, window_bounds = array<i64: 16, 32>}]} {
    %c0 = arith.constant 0 : index
    %c0_0 = arith.constant 0 : index
    %0 = vector.load %arg1[%c0, %c0_0] : memref<16x32xf32, #tpu.memory_space<vmem>>, vector<16x32xf32>
    %1 = arith.truncf %0 : vector<16x32xf32> to vector<16x32xbf16>
    %c0_1 = arith.constant 0 : index
    %c0_2 = arith.constant 0 : index
    %2 = vector.load %arg2[%c0_1, %c0_2] : memref<32x16xbf16, #tpu.memory_space<vmem>>, vector<32x16xbf16>
    %cst = arith.constant dense<0.000000e+00> : vector<16x16xf32>
    %3 = tpu.matmul %1, %2, %cst {dimension_numbers = #tpu.dot_dimension_numbers<[1], [0], [0], [1], [0, 0, 1, 1], [], []>} : vector<16x32xbf16>, vector<32x16xbf16>, vector<16x16xf32> -> vector<16x16xf32>
    %c0_3 = arith.constant 0 : index
    %c0_4 = arith.constant 0 : index
    %4 = vector.load %arg3[%c0_3, %c0_4] : memref<1x16xf32, #tpu.memory_space<vmem>>, vector<1x16xf32>
    %5 = vector.broadcast %4 : vector<1x16xf32> to vector<16x16xf32>
    %6 = arith.addf %3, %5 : vector<16x16xf32>
    %cst_5 = arith.constant 0.000000e+00 : f32
    %7 = vector.broadcast %cst_5 : f32 to vector<16x16xf32>
    %8 = arith.maximumf %6, %7 : vector<16x16xf32>
    %9 = arith.truncf %8 : vector<16x16xf32> to vector<16x16xbf16>
    %c0_6 = arith.constant 0 : index
    %c0_7 = arith.constant 0 : index
    %10 = vector.load %arg4[%c0_6, %c0_7] : memref<16x32xbf16, #tpu.memory_space<vmem>>, vector<16x32xbf16>
    %cst_8 = arith.constant dense<0.000000e+00> : vector<16x32xf32>
    %11 = tpu.matmul %9, %10, %cst_8 {dimension_numbers = #tpu.dot_dimension_numbers<[1], [0], [0], [1], [0, 0, 1, 1], [], []>} : vector<16x16xbf16>, vector<16x32xbf16>, vector<16x32xf32> -> vector<16x32xf32>
    %c0_9 = arith.constant 0 : index
    %c0_10 = arith.constant 0 : index
    %12 = vector.load %arg5[%c0_9, %c0_10] : memref<1x32xf32, #tpu.memory_space<vmem>>, vector<1x32xf32>
    %13 = vector.broadcast %12 : vector<1x32xf32> to vector<16x32xf32>
    %14 = arith.addf %11, %13 : vector<16x32xf32>
    %cst_11 = arith.constant 0.000000e+00 : f32
    %15 = vector.broadcast %cst_11 : f32 to vector<16x32xf32>
    %16 = arith.maximumf %14, %15 : vector<16x32xf32>
    %c0_12 = arith.constant 0 : index
    %c0_13 = arith.constant 0 : index
    %17 = vector.load %arg1[%c0_12, %c0_13] : memref<16x32xf32, #tpu.memory_space<vmem>>, vector<16x32xf32>
    %18 = arith.addf %16, %17 : vector<16x32xf32>
    %c0_14 = arith.constant 0 : index
    %c0_15 = arith.constant 0 : index
    %19 = vector.load %arg6[%c0_14, %c0_15] : memref<16x32xf32, #tpu.memory_space<vmem>>, vector<16x32xf32>
    tpu.vector_store %arg6[%c0_14, %c0_15], %18 {strides = array<i32>} : memref<16x32xf32, #tpu.memory_space<vmem>>, vector<16x32xf32>,
    return
  }
  func.func @transform_0(%arg0: i32) -> (i32, i32) {
    %c0_i32 = arith.constant 0 : i32
    %c0_i32_0 = arith.constant 0 : i32
    return %arg0, %c0_i32 : i32, i32
  }
  func.func @transform_1(%arg0: i32) -> (i32, i32) {
    %c0_i32 = arith.constant 0 : i32
    %c0_i32_0 = arith.constant 0 : i32
    %c0_i32_1 = arith.constant 0 : i32
    return %c0_i32, %c0_i32_0 : i32, i32
  }
  func.func @transform_2(%arg0: i32) -> (i32, i32) {
    %c0_i32 = arith.constant 0 : i32
    %c0_i32_0 = arith.constant 0 : i32
    %c0_i32_1 = arith.constant 0 : i32
    return %c0_i32, %c0_i32_0 : i32, i32
  }
  func.func @transform_3(%arg0: i32) -> (i32, i32) {
    %c0_i32 = arith.constant 0 : i32
    %c0_i32_0 = arith.constant 0 : i32
    %c0_i32_1 = arith.constant 0 : i32
    return %c0_i32, %c0_i32_0 : i32, i32
  }
  func.func @transform_4(%arg0: i32) -> (i32, i32) {
    %c0_i32 = arith.constant 0 : i32
    %c0_i32_0 = arith.constant 0 : i32
    %c0_i32_1 = arith.constant 0 : i32
    return %c0_i32, %c0_i32_0 : i32, i32
  }
  func.func @transform_5(%arg0: i32) -> (i32, i32) {
    %c0_i32 = arith.constant 0 : i32
    %c0_i32_0 = arith.constant 0 : i32
    return %arg0, %c0_i32 : i32, i32
  }
}

</mosaic_0001>

<bundles_post_ra>
// kernel: tpu_custom_call.1
= control target key start
LH: loop header
LB: loop body
LE: loop exit
PB: predicated region body
PF: predicated region fallthrough
CT: control target
= control target key end

     0   :  { %v236_v1 = vmov 0.0   ;;  %vm237_vm0 = vmmov 0   ;;  %s307_s0 = inlined_call_operand.vmem [shape: f32[16,32], index: 0, kind: input, shape index: {}]   ;;  %s308_s1 = inlined_call_operand.vmem [shape: bf16[32,16], index: 1, kind: input, shape index: {}]   ;;  %s309_s2 = inlined_call_operand.vmem [shape: f32[1,16], index: 2, kind: input, shape index: {}]   ;;  %s310_s3 = inlined_call_operand.vmem [shape: bf16[16,32], index: 3, kind: input, shape index: {}]   ;;  %s311_s4 = inlined_call_operand.vmem [shape: f32[1,32], index: 4, kind: input, shape index: {}]   ;;  %s312_s5 = inlined_call_operand.hbm [shape: f32[16,32], index: 5, kind: output, shape index: {}]  }
   0x1   :  { %v209_v0 = vld [vmem:[%s308_s1] sm:$0xff]   ;;  %190 = vmatprep.subr.bf16.mxu0 %v236_v1  ;;  %198 = vmatprep.subr.bf16.mxu1 %v236_v1  ;;  %v210_v2 = vld [vmem:[%s308_s1 + $0x8] sm:$0xff]  }
   0x2   :  { %191 = vmatpush3.bf16.msra.mxu0 %v209_v0  ;;  %194 = vmatprep.mubr.msk.bf16.mxu0 %vm237_vm0, %v236_v1  ;;  %v22_v3 = vld [vmem:[%s307_s0] sm:$0xff]  ;;  %v23_v4 = vld [vmem:[%s307_s0 + $0x8] sm:$0xff] }
   0x3   :  { %192 = vmatprep.subr.bf16.mxu0 %v236_v1  ;;  %200 = vmatprep.mubr.msk.bf16.mxu1 %vm237_vm0, %v236_v1 }
   0x4   :  { %10 = vsyncpa [#allocation3], 0  ;;  %v24_v5 = vpack.c.bf16 %v23_v4, %v22_v3  ;;  %vm48_vm1 = vcmask 261120   ;;  %v211_v6 = vld [vmem:[%s310_s3] sm:$0xff]   ;;  %vm111_vm2 = vcmask 130048  }
   0x5   :  { %199 = vmatpush3.bf16.msra.mxu1 %v211_v6  ;;  %v178_v7 = vld [vmem:[%s309_s2] ss:$0 sm:$0xff]  ;;  %s238_s2 = smov [#allocation2]  }
   0x6   :  { %193 = vmatpush3.bf16.msra.mxu0 %v210_v2  ;;  %v182_v17 = vld [vmem:[%s311_s4] ss:$0 sm:$0xff]  ;;  %s167_s3 = sshll.u32 %s238_s2, 4  ;;  %s168_s3 = int_to_ptr.vmem [resolvable:$true] %s167_s3 }
   0x7   :  { %s212_s30 = scalar_lea.vmem %s168_s3, 256  ;;  %p217_p1 = scmp.lt.s32.totalorder %s168_s3, %s168_s3 }
   0x8   :  { %p213_p0 = scmp.ne.s32.totalorder %s168_s3, %s212_s30  ;;  %p218_p2 = scmp.lt.s32.totalorder %s212_s30, %s212_s30 }
   0x9   :  { %195 = vmatmul.mubr.msk.bf16.vlgmr.msra.gmra.mrb[0].mxu0 %vm48_vm1, %v24_v5 }
   0xa   :  { %p219_p3 = por %p218_p2, %p217_p1 }
   0xc   :  { %p220_p4 = pnand %p219_p3, %p213_p0 }
  0xdc   :  { %v86_v8 = vpop.f32.mrb[0].mxu0 }
  0xdd   :  { %v87_v9 = vadd.f32 %v178_v7, %v86_v8  ;;  %v196_v10 = vpop.f32.mrb[1].mxu0 }
  0xde   :  { %v89_v11 = vpop.f32.mrb[2].mxu0 }
  0xdf   :  { %v90_v12 = vadd.f32 %v178_v7, %v89_v11  ;;  %v197_v13 = vpop.f32.mrb[3].mxu0  ;;  %v93_v14 = vmax.f32 %v87_v9, 0.0 }
  0xe1   :  { %v94_v15 = vmax.f32 %v90_v12, 0.0 }
  0xe3   :  { %v95_v16 = vpack.c.bf16 %v94_v15, %v93_v14 }
  0xe5   :  { %201 = vmatmul.mubr.msk.bf16.vlgmr.msra.gmra.mrb[0].mxu1 %vm111_vm2, %v95_v16 }
 0x1b8   :  { %v149_v18 = vpop.f32.mrb[0].mxu1 }
 0x1b9   :  { %v150_v19 = vadd.f32 %v182_v17, %v149_v18  ;;  %v202_v20 = vpop.f32.mrb[1].mxu1 }
 0x1ba   :  { %v152_v21 = vpop.f32.mrb[2].mxu1 }
 0x1bb   :  { %v156_v22 = vmax.f32 %v150_v19, 0.0  ;;  %v153_v23 = vadd.f32 %v182_v17, %v152_v21  ;;  %v203_v24 = vpop.f32.mrb[3].mxu1 }
 0x1bd   :  { %v158_v25 = vadd.f32 %v156_v22, %v22_v3  ;;  %v157_v26 = vmax.f32 %v153_v23, 0.0 }
 0x1bf   :  { %160 = vst.msk [vmem:[#allocation2] sm:$0xff] %vm48_vm1, %v158_v25  ;;  %v159_v27 = vadd.f32 %v157_v26, %v23_v4 }
 0x1c1   :  { %161 = vst.msk [vmem:[#allocation2 + $0x8] sm:$0xff] %vm48_vm1, %v159_v27 }
 0x1c2   :  { %223 = shalt.err (!%p220_p4)
}
 0x1c3   :  { %s224_s7 = scalar_lea.hbm %s312_s5, 256 }
 0x1c4   :  { %p225_p5 = scmp.ne.s32.totalorder %s312_s5, %s224_s7  ;;  %p228_p6 = scmp.lt.u32.totalorder %s224_s7, %s312_s5 }
 0x1c6   :  { %p230_p7 = pnand %p228_p6, %p225_p5 }
 0x1c8   :  { %233 = shalt.err (!%p230_p7)
}
 0x1c9   :  { %s239_s12 = smov 128   ;;  %s240_s13 = smov 8  }
 0x1ca   :  { %173 = dma.vmem_to_hbm [thread:$0]  %s168_s3, 256, %s312_s5, [#allocation3], %s239_s12, %s239_s12, %s240_s13  }
 0x1cb   :  { %234 = dma.done.wait [#allocation3], 256  }
 0x1cc   :  { %235 = vsyncadd [#allocation3], 4294967040 }
 0x1cd   :  { %177 = vsyncpa [#allocation3], 1 }

</bundles_post_ra>
